<compile_context>
chip_gen: v6e
topology: v6e:2x2x1
jax: 0.10.0
libtpu: 0.0.40
codegen_flags: <defaults>
</compile_context>

<pallas_src>
import functools

import jax
import jax.numpy as jnp
from jax.experimental import pallas as pl
from jax.experimental.pallas import tpu as pltpu


def _label_smoothing_kernel(x_ref, t_ref, o_ref, *, confidence, smoothing, inv_c):
    x = x_ref[...].astype(jnp.float32)            # (TILE_N, C) logits, f32 math
    t = t_ref[...]                                # (TILE_N, 1) int32 targets

    # Stable log-sum-exp pieces; all reductions keepdims -> (TILE_N, 1).
    m = jnp.max(x, axis=-1, keepdims=True)
    s = jnp.sum(jnp.exp(x - m), axis=-1, keepdims=True)
    lse = m + jnp.log(s)

    # Per-row sum of logits and the logit at the target class (one-hot select;
    # no gather op needed on TPU).
    sx = jnp.sum(x, axis=-1, keepdims=True)
    col = jax.lax.broadcasted_iota(jnp.int32, x.shape, dimension=1)
    x_t = jnp.sum(jnp.where(col == t, x, 0.0), axis=-1, keepdims=True)

    # nll    = lse - x_t
    # smooth = lse - sx / C
    # loss   = confidence * nll + smoothing * smooth
    #        = lse - confidence * x_t - smoothing * sx / C   (confidence + smoothing == 1)
    o_ref[...] = lse - confidence * x_t - smoothing * (sx * inv_c)


def label_smoothing_loss(x, target, smoothing=0.1, block_rows=256):
    """Pallas equivalent of LabelSmoothing(smoothing)(x, target).

    x:      (N, C) float logits (f32 or bf16; bf16 halves HBM bytes, math stays f32)
    target: (N,)   int class indices
    returns scalar float32 loss
    """
    n, c = x.shape
    confidence = 1.0 - smoothing
    t2d = target.astype(jnp.int32).reshape(n, 1)

    # Row tile: multiple of 8 (sublane) unless the whole batch is smaller.
    if n >= 8:
        tile_n = max(8, (min(block_rows, n) // 8) * 8)
    else:
        tile_n = n
    grid = (pl.cdiv(n, tile_n),)

    kernel = functools.partial(
        _label_smoothing_kernel,
        confidence=float(confidence),
        smoothing=float(smoothing),
        inv_c=float(1.0 / c),
    )

    # Double-buffered input blocks; only raise the scoped VMEM limit when blocks
    # actually need it (keeps defaults on v5e/v6e/v7x for small shapes).
    block_bytes = 2 * (tile_n * c * x.dtype.itemsize + tile_n * 4) + 2 * tile_n * 4
    if block_bytes > (24 << 20):
        compiler_params = pltpu.CompilerParams(
            dimension_semantics=("parallel",),
            vmem_limit_bytes=int(block_bytes + (8 << 20)),
        )
    else:
        compiler_params = pltpu.CompilerParams(dimension_semantics=("parallel",))

    per_row = pl.pallas_call(
        kernel,
        out_shape=jax.ShapeDtypeStruct((n, 1), jnp.float32),
        grid=grid,
        in_specs=[
            pl.BlockSpec((tile_n, c), lambda i: (i, 0)),
            pl.BlockSpec((tile_n, 1), lambda i: (i, 0)),
        ],
        out_specs=pl.BlockSpec((tile_n, 1), lambda i: (i, 0)),
        compiler_params=compiler_params,
    )(x, t2d)

    # TODO(synk): for very large vocab C (128K+), add a second "arbitrary" grid
    # axis over C with an online (running max / running sum-exp) LSE in scratch
    # instead of a single full-C block per row tile.
    return jnp.mean(per_row)


def _reference(x, target, smoothing=0.1):
    confidence = 1.0 - smoothing
    logprobs = jax.nn.log_softmax(x.astype(jnp.float32), axis=-1)
    nll = -jnp.take_along_axis(logprobs, target[:, None].astype(jnp.int32), axis=-1)[:, 0]
    smooth = -jnp.mean(logprobs, axis=-1)
    return jnp.mean(confidence * nll + smoothing * smooth)


if __name__ == "__main__":
    key = jax.random.PRNGKey(0)
    kx, kt = jax.random.split(key)

    N, C = 16, 128          # small demo: 16 rows, 128 classes (lane-dense)
    smoothing = 0.1

    x = jax.random.normal(kx, (N, C), dtype=jnp.float32)
    target = jax.random.randint(kt, (N,), 0, C, dtype=jnp.int32)

    # block_rows=8 -> 2 grid steps: exercises the tiled / pipelined path.
    loss = label_smoothing_loss(x, target, smoothing=smoothing, block_rows=8)
    loss = jax.block_until_ready(loss)
    ref = _reference(x, target, smoothing=smoothing)
    assert jnp.allclose(loss, ref, atol=1e-5, rtol=1e-5), (loss, ref)

    # bf16 logits (documented contract: cast to f32 inside the kernel).
    x_bf16 = x.astype(jnp.bfloat16)
    loss_bf16 = jax.block_until_ready(
        label_smoothing_loss(x_bf16, target, smoothing=smoothing, block_rows=8)
    )
    ref_bf16 = _reference(x_bf16.astype(jnp.float32), target, smoothing=smoothing)
    assert jnp.allclose(loss_bf16, ref_bf16, atol=2e-2, rtol=2e-2), (loss_bf16, ref_bf16)

    print("KERNEL_OK")
</pallas_src>

<mosaic_0001>
module attributes {stable_mosaic.version = 11 : i64} {
  func.func @_label_smoothing_kernel(%arg0: i32, %arg1: memref<8x128xf32, #tpu.memory_space<vmem>>, %arg2: memref<8x1xi32, #tpu.memory_space<vmem>>, %arg3: memref<8x1xf32, #tpu.memory_space<vmem>>) attributes {dimension_semantics = [#tpu.dimension_semantics<parallel>], iteration_bounds = array<i64: 2>, scalar_prefetch = 0 : i64, scratch_operands = 0 : i64, tpu.core_type = #tpu.core_type<tc>, window_params = [{transform_indices = @transform_0, window_bounds = array<i64: 8, 128>}, {transform_indices = @transform_1, window_bounds = array<i64: 8, 1>}, {transform_indices = @transform_2, window_bounds = array<i64: 8, 1>}]} {
    %c0 = arith.constant 0 : index
    %c0_0 = arith.constant 0 : index
    %0 = vector.load %arg1[%c0, %c0_0] : memref<8x128xf32, #tpu.memory_space<vmem>>, vector<8x128xf32>
    %c0_1 = arith.constant 0 : index
    %c0_2 = arith.constant 0 : index
    %1 = vector.load %arg2[%c0_1, %c0_2] : memref<8x1xi32, #tpu.memory_space<vmem>>, vector<8x1xi32>
    %cst = arith.constant dense<0xFF800000> : vector<8xf32>
    %2 = vector.multi_reduction <maximumf>, %0, %cst [1] : vector<8x128xf32> to vector<8xf32>
    %3 = vector.shape_cast %2 : vector<8xf32> to vector<8x1xf32>
    %4 = vector.broadcast %3 : vector<8x1xf32> to vector<8x128xf32>
    %5 = arith.subf %0, %4 : vector<8x128xf32>
    %6 = math.exp %5 : vector<8x128xf32>
    %cst_3 = arith.constant dense<0.000000e+00> : vector<8xf32>
    %7 = vector.multi_reduction <add>, %6, %cst_3 [1] : vector<8x128xf32> to vector<8xf32>
    %8 = vector.shape_cast %7 : vector<8xf32> to vector<8x1xf32>
    %9 = math.log %8 : vector<8x1xf32>
    %10 = arith.addf %3, %9 : vector<8x1xf32>
    %cst_4 = arith.constant dense<0.000000e+00> : vector<8xf32>
    %11 = vector.multi_reduction <add>, %0, %cst_4 [1] : vector<8x128xf32> to vector<8xf32>
    %12 = vector.shape_cast %11 : vector<8xf32> to vector<8x1xf32>
    %13 = tpu.iota {dimensions = array<i32: 1>} : vector<8x128xi32>
    %14 = vector.broadcast %1 : vector<8x1xi32> to vector<8x128xi32>
    %15 = arith.cmpi eq, %13, %14 : vector<8x128xi32>
    %cst_5 = arith.constant 0.000000e+00 : f32
    %16 = vector.broadcast %cst_5 : f32 to vector<8x128xf32>
    %17 = arith.select %15, %0, %16 : vector<8x128xi1>, vector<8x128xf32>
    %cst_6 = arith.constant dense<0.000000e+00> : vector<8xf32>
    %18 = vector.multi_reduction <add>, %17, %cst_6 [1] : vector<8x128xf32> to vector<8xf32>
    %19 = vector.shape_cast %18 : vector<8xf32> to vector<8x1xf32>
    %cst_7 = arith.constant 0.899999976 : f32
    %20 = vector.broadcast %cst_7 : f32 to vector<8x1xf32>
    %21 = arith.mulf %20, %19 : vector<8x1xf32>
    %22 = arith.subf %10, %21 : vector<8x1xf32>
    %cst_8 = arith.constant 7.812500e-03 : f32
    %23 = vector.broadcast %cst_8 : f32 to vector<8x1xf32>
    %24 = arith.mulf %12, %23 : vector<8x1xf32>
    %cst_9 = arith.constant 1.000000e-01 : f32
    %25 = vector.broadcast %cst_9 : f32 to vector<8x1xf32>
    %26 = arith.mulf %25, %24 : vector<8x1xf32>
    %27 = arith.subf %22, %26 : vector<8x1xf32>
    %c0_10 = arith.constant 0 : index
    %c0_11 = arith.constant 0 : index
    %28 = vector.load %arg3[%c0_10, %c0_11] : memref<8x1xf32, #tpu.memory_space<vmem>>, vector<8x1xf32>
    tpu.vector_store %arg3[%c0_10, %c0_11], %27 {strides = array<i32>} : memref<8x1xf32, #tpu.memory_space<vmem>>, vector<8x1xf32>,
    return
  }
  func.func @transform_0(%arg0: i32) -> (i32, i32) {
    %c0_i32 = arith.constant 0 : i32
    %c0_i32_0 = arith.constant 0 : i32
    return %arg0, %c0_i32 : i32, i32
  }
  func.func @transform_1(%arg0: i32) -> (i32, i32) {
    %c0_i32 = arith.constant 0 : i32
    %c0_i32_0 = arith.constant 0 : i32
    return %arg0, %c0_i32 : i32, i32
  }
  func.func @transform_2(%arg0: i32) -> (i32, i32) {
    %c0_i32 = arith.constant 0 : i32
    %c0_i32_0 = arith.constant 0 : i32
    return %arg0, %c0_i32 : i32, i32
  }
}

</mosaic_0001>

<bundles_post_ra>
// kernel: tpu_custom_call.1
= control target key start
LH: loop header
LB: loop body
LE: loop exit
PB: predicated region body
PF: predicated region fallthrough
CT: control target
= control target key end

     0   :  { %s299_s9 = smov 0   ;;  %s324_s0 = inlined_call_operand.vmem [shape: f32[16,128], index: 0, kind: input, shape index: {}]   ;;  %s325_s1 = inlined_call_operand.vmem [shape: s32[16,1], index: 1, kind: input, shape index: {}]   ;;  %s326_s2 = inlined_call_operand.vmem [shape: f32[16,1], index: 2, kind: output, shape index: {}]  }
   0x1 LB: > { %s251_s10 = sadd.s32 4294967295, %s281_s9   ;;  %p255_p0 = scmp.ge.s32.totalorder %s281_s9, 1  ;;  %s281_s9 = sphi %s299_s9, %s12_s9  }
   0x2   : > { %p120_p1 = scmp.lt.s32.totalorder %s281_s9, 3 }
   0x4   : > { %p121_p2 = pnand %p255_p0, %p120_p1 }
   0x5   : > { %p144_p3 = scmp.lt.s32.totalorder (!%p121_p2), %s251_s10, 1 }
   0x6   : > { %124 = sbr.rel (%p121_p2) target bundleno = 332 (0x14c), region = 28 }
   0xb   : > { %v283_v0 = vmov 0   ;;  %s328_s10 = smov (!%p144_p3, %s251_s10), 1  ;;  %v170_v6 = vlaneseq  ;;  %vm184_vm1 = vcmask 7168  }
   0xc   : > { %270 = vset.pattern.permute.xlu0 %v283_v0  ;;  %s307_s11 = sshll.u32 %s328_s10, 3 }
   0xd   : > { %s147_s14 = scalar_lea.vmem %s324_s0, %s307_s11  ;;  %s151_s17 = scalar_lea.vmem %s325_s1, %s307_s11  ;;  %v171_v7 = vand.u32 127, %v170_v6 }
   0xe   : > { %v156_v1 = vld [vmem:[%s147_s14] sm:$0xff]  ;;  %s155_s20 = scalar_lea.vmem %s326_s2, %s307_s11 }
   0xf   : > { %158 = vmax.xlane.f32.xlu0 %v156_v1  ;;  %v157_v2 = vld [vmem:[%s151_s17] sm:$0xff] }
  0x25   : > { %173 = vperm.xlu0 %270, %v157_v2  }
  0x98   : > { %v159_v3 = vpop.xlane.xlu0 %158 }
  0x99   : > { %v160_v4 = vsub.f32 %v156_v1, %v159_v3 }
  0x9b   : > { %v161_v5 = vmul.f32 1.442695, %v160_v4 }
  0x9d   : > { %271 = vpow2.f32 %v161_v5 }
  0xa0   : > { %v174_v9 = vpop.permute.xlu0 %173 }
  0xa1   : > { %vm175_vm0 = vcmp.eq.s32.totalorder %v171_v7, %v174_v9 }
  0xa2   : > { %v176_v10 = vsel %vm175_vm0, %v156_v1, 0.0 }
  0xaa   : > { %v272_v8 = vpop.eup %271 }
  0xab   : > { %163 = vadd.xlane.f32.xlu1 %v272_v8 }
  0xaf   : > { %168 = vadd.xlane.f32.xlu1 %v156_v1 }
  0xb3   : > { %177 = vadd.xlane.f32.xlu1 %v176_v10 }
 0x134   : > { %v164_v11 = vpop.xlane.xlu1 %163 }
 0x135   : > { %273 = vlog2.f32 %v164_v11 }
 0x138   : > { %v169_v12 = vpop.xlane.xlu1 %168 }
 0x139   : > { %v181_v16 = vmul.f32 0.0078125, %v169_v12 }
 0x13b   : > { %v182_v19 = vmul.f32 0.1, %v181_v16 }
 0x13c   : > { %v178_v13 = vpop.xlane.xlu1 %177 }
 0x13d   : > { %v179_v17 = vmul.f32 0.9, %v178_v13 }
 0x142   : > { %v274_v14 = vpop.eup %273 }
 0x143   : > { %v166_v15 = vmul.f32 0.6931472, %v274_v14 }
 0x145   : > { %v167_v18 = vadd.f32 %v166_v15, %v159_v3 }
 0x147   : > { %v180_v20 = vsub.f32 %v167_v18, %v179_v17 }
 0x149   : > { %v183_v21 = vsub.f32 %v180_v20, %v182_v19 }
 0x14b   : > { %185 = vst.msk [vmem:[%s155_s20] sm:$0xff] %vm184_vm1, %v183_v21 }
 0x14c PF: > { %s12_s9 = sadd.s32 1, %s281_s9  }
 0x14d   : > { %p9_p4 = scmp.ge.s32.totalorder %s12_s9, 4  }
 0x14f   :  { %11 = sbr.rel (!%p9_p4) target bundleno = 1 (0x1), region = 61 }

</bundles_post_ra>
